<compile_context>
chip_gen: v6e
topology: v6e:2x2x1
jax: 0.10.0
libtpu: 0.0.40
codegen_flags: <defaults>
</compile_context>

<pallas_src>
import functools

import jax
import jax.numpy as jnp
from jax import lax
from jax.experimental import pallas as pl
from jax.experimental.pallas import tpu as pltpu


# ----------------------------------------------------------------------------
# Pallas kernel: full per-image loss, grid = (B,)
# ----------------------------------------------------------------------------
def _multibox_loss_kernel(loc_p_ref, conf_ref, loc_t_ref, lab_ref,   # inputs
                          out_ref,                                    # output
                          *, negpos_ratio, num_dbox):
    C = conf_ref.shape[1]

    labels = lab_ref[0]                               # (1, D) int32, lane-dense
    valid = labels >= 0                               # padded boxes carry -1
    pos_f = (labels > 0).astype(jnp.float32)          # (1, D)

    # ---- softmax cross-entropy per box: per-class row reads, no (C,D) temp --
    m = conf_ref[0, 0:1, :].astype(jnp.float32)
    for c in range(1, C):
        m = jnp.maximum(m, conf_ref[0, c:c + 1, :].astype(jnp.float32))
    s = jnp.zeros_like(m)
    picked = jnp.zeros_like(m)
    for c in range(C):
        row = conf_ref[0, c:c + 1, :].astype(jnp.float32)
        s = s + jnp.exp(row - m)
        picked = picked + jnp.where(labels == c, row, 0.0)
    ce = jnp.log(s) + m - picked                      # (1, D)
    ce = jnp.where(valid, ce, 0.0)                    # padded boxes contribute 0
    ce_neg = jnp.where(labels > 0, 0.0, ce)           # positives zeroed (torch)

    # ---- hard-negative mining via k-th-largest threshold --------------------
    # ce_neg >= 0, so int32 bit-pattern order == value order.  Find the
    # smallest bit threshold t* with count(ce_neg > t*) < num_neg; selection
    # (bits >= t*) is identical to the strict-greater pairwise-rank selection.
    num_pos = jnp.sum(pos_f, axis=1, keepdims=True)                   # (1, 1)
    num_neg = jnp.minimum(num_pos * float(negpos_ratio),
                          jnp.float32(num_dbox))                      # (1, 1)
    bits = pltpu.bitcast(ce_neg, jnp.int32)                           # (1, D)

    def bs_body(_, carry):
        lo, hi = carry                                                # (1,1) i32
        mid = lo + ((hi - lo) >> 1)                                   # no overflow
        cnt = jnp.sum((bits > mid).astype(jnp.float32),
                      axis=1, keepdims=True)                          # (1, 1)
        below = cnt < num_neg
        lo_new = jnp.where(below, lo, mid + 1)
        hi_new = jnp.where(below, mid, hi)
        return lo_new, hi_new

    lo0 = jnp.zeros((1, 1), jnp.int32)
    hi0 = jnp.full((1, 1), 0x7F800000, jnp.int32)     # bit pattern of +inf
    _, tstar = lax.fori_loop(0, 31, bs_body, (lo0, hi0))
    neg_f = jnp.where((bits >= tstar) & (num_neg > 0.0), 1.0, 0.0)    # (1, D)

    sel = jnp.maximum(pos_f, neg_f)                   # pos | hard negatives
    loss_c = jnp.sum(ce * sel, axis=1, keepdims=True)                 # (1, 1)

    # ---- smooth-L1 over positives, unrolled over the 4 coords ---------------
    sl1 = jnp.zeros_like(pos_f)
    for k in range(4):
        dk = (loc_p_ref[0, k:k + 1, :].astype(jnp.float32) -
              loc_t_ref[0, k:k + 1, :].astype(jnp.float32))
        ad = jnp.abs(dk)
        sl1 = sl1 + jnp.where(ad < 1.0, 0.5 * dk * dk, ad - 0.5)
    loss_l = jnp.sum(sl1 * pos_f, axis=1, keepdims=True)              # (1, 1)

    # ---- single lane-dense (3, 128) payload: [loss_l, loss_c, num_pos] -----
    rows = lax.broadcasted_iota(jnp.int32, (3, 128), 0)
    payload = (jnp.where(rows == 0, loss_l, 0.0) +
               jnp.where(rows == 1, loss_c, 0.0) +
               jnp.where(rows == 2, num_pos, 0.0))
    out_ref[...] = payload[None]


def multibox_loss_pallas(loc_data, conf_data, loc_t, conf_t, negpos_ratio=3):
    """loc_data (B,D,4), conf_data (B,D,C), loc_t (B,D,4), conf_t (B,D) int."""
    B, D, _ = loc_data.shape
    C = conf_data.shape[-1]
    Dp = ((D + 127) // 128) * 128                      # lane-dense pad of D

    # Lane-dense layouts (D last); native dtypes kept (no f32 pre-cast).
    loc_p = jnp.swapaxes(loc_data, 1, 2)               # (B, 4, D)
    conf = jnp.swapaxes(conf_data, 1, 2)               # (B, C, D)
    loc_g = jnp.swapaxes(loc_t, 1, 2)                  # (B, 4, D)
    labels = conf_t.astype(jnp.int32)[:, None, :]      # (B, 1, D)

    if Dp != D:   # pad D to the lane width; padded boxes get label -1
        pad = Dp - D
        loc_p = jnp.pad(loc_p, ((0, 0), (0, 0), (0, pad)))
        conf = jnp.pad(conf, ((0, 0), (0, 0), (0, pad)))
        loc_g = jnp.pad(loc_g, ((0, 0), (0, 0), (0, pad)))
        labels = jnp.pad(labels, ((0, 0), (0, 0), (0, pad)), constant_values=-1)

    kernel = functools.partial(_multibox_loss_kernel,
                               negpos_ratio=negpos_ratio, num_dbox=D)

    partials = pl.pallas_call(
        kernel,
        out_shape=jax.ShapeDtypeStruct((B, 3, 128), jnp.float32),
        grid_spec=pltpu.PrefetchScalarGridSpec(
            num_scalar_prefetch=0,
            grid=(B,),
            in_specs=[
                pl.BlockSpec((1, 4, Dp), lambda b: (b, 0, 0)),
                pl.BlockSpec((1, C, Dp), lambda b: (b, 0, 0)),
                pl.BlockSpec((1, 4, Dp), lambda b: (b, 0, 0)),
                pl.BlockSpec((1, 1, Dp), lambda b: (b, 0, 0)),
            ],
            out_specs=pl.BlockSpec((1, 3, 128), lambda b: (b, 0, 0)),
        ),
        compiler_params=pltpu.CompilerParams(
            dimension_semantics=("parallel",),
            vmem_limit_bytes=32 * 1024 * 1024),
    )(loc_p, conf, loc_g, labels)

    loss_l_sum = jnp.sum(partials[:, 0, 0])
    loss_c_sum = jnp.sum(partials[:, 1, 0])
    n = jnp.maximum(jnp.sum(partials[:, 2, 0]), 1.0)   # guard: zero positives
    return loss_l_sum / n, loss_c_sum / n


# ----------------------------------------------------------------------------
# Matching (glue, plain JAX) -- replicates SSD's match()/encode()/jaccard()
# TODO(synk): the data-dependent jaccard/argmax/scatter matching has no clean
#             Pallas equivalent (ragged per-image object counts); kept in XLA.
# ----------------------------------------------------------------------------
def _point_form(boxes):
    return jnp.concatenate([boxes[:, :2] - boxes[:, 2:] / 2.0,
                            boxes[:, :2] + boxes[:, 2:] / 2.0], axis=1)


def _jaccard(box_a, box_b):
    max_xy = jnp.minimum(box_a[:, None, 2:], box_b[None, :, 2:])
    min_xy = jnp.maximum(box_a[:, None, :2], box_b[None, :, :2])
    inter = jnp.maximum(max_xy - min_xy, 0.0)
    inter = inter[..., 0] * inter[..., 1]
    area_a = ((box_a[:, 2] - box_a[:, 0]) * (box_a[:, 3] - box_a[:, 1]))[:, None]
    area_b = ((box_b[:, 2] - box_b[:, 0]) * (box_b[:, 3] - box_b[:, 1]))[None, :]
    return inter / (area_a + area_b - inter)


def _encode(matched, priors, variances):
    g_cxcy = (matched[:, :2] + matched[:, 2:]) / 2.0 - priors[:, :2]
    g_cxcy = g_cxcy / (variances[0] * priors[:, 2:])
    g_wh = (matched[:, 2:] - matched[:, :2]) / priors[:, 2:]
    g_wh = jnp.log(g_wh) / variances[1]
    return jnp.concatenate([g_cxcy, g_wh], axis=1)


def _match_single(truths, labels, dbox, thresh, variances):
    overlaps = _jaccard(truths, _point_form(dbox))   # (n_obj, D)
    best_prior_idx = jnp.argmax(overlaps, axis=1)
    best_truth_overlap = jnp.max(overlaps, axis=0)
    best_truth_idx = jnp.argmax(overlaps, axis=0)
    best_truth_overlap = best_truth_overlap.at[best_prior_idx].set(2.0)
    best_truth_idx = best_truth_idx.at[best_prior_idx].set(
        jnp.arange(truths.shape[0]))
    matches = truths[best_truth_idx]
    conf = labels[best_truth_idx].astype(jnp.int32) + 1
    conf = jnp.where(best_truth_overlap < thresh, 0, conf)
    loc = _encode(matches, dbox, variances)
    return loc, conf


def match_targets(targets, dbox, thresh=0.5, variances=(0.1, 0.2)):
    fn = lambda t: _match_single(t[:, :4], t[:, 4], dbox, thresh, variances)
    return jax.vmap(fn)(targets)


# ----------------------------------------------------------------------------
# Pure-JAX reference (sort based) for a sanity check
# ----------------------------------------------------------------------------
def _reference_loss(loc_data, conf_data, loc_t, conf_t, negpos_ratio=3):
    B, D, C = conf_data.shape
    pos = conf_t > 0
    diff = loc_data - loc_t
    ad = jnp.abs(diff)
    sl1 = jnp.where(ad < 1.0, 0.5 * diff * diff, ad - 0.5).sum(-1)
    loss_l = jnp.sum(sl1 * pos)
    lse = jax.scipy.special.logsumexp(conf_data, axis=-1)
    picked = jnp.take_along_axis(conf_data, conf_t[..., None], axis=-1)[..., 0]
    ce = lse - picked
    ce_neg = jnp.where(pos, 0.0, ce)
    order = jnp.argsort(-ce_neg, axis=1)
    rank = jnp.argsort(order, axis=1)
    num_pos = pos.sum(1, keepdims=True)
    num_neg = jnp.minimum(num_pos * negpos_ratio, D)
    neg = rank < num_neg
    loss_c = jnp.sum(ce * (pos | neg))
    n = jnp.maximum(num_pos.sum().astype(jnp.float32), 1.0)
    return loss_l / n, loss_c / n


# ----------------------------------------------------------------------------
if __name__ == "__main__":
    B, C, n_obj = 2, 8, 3
    fm = 8  # 8x8 feature map, 4 default boxes per cell -> D = 256 default boxes

    idx = (jnp.arange(fm, dtype=jnp.float32) + 0.5) / fm
    cy, cx = jnp.meshgrid(idx, idx, indexing="ij")
    centers = jnp.stack([cx.ravel(), cy.ravel()], axis=-1)            # (64, 2)
    sizes = jnp.array([[0.15, 0.15], [0.30, 0.30],
                       [0.15, 0.30], [0.30, 0.15]], dtype=jnp.float32)
    dbox = jnp.concatenate([jnp.repeat(centers, 4, axis=0),
                            jnp.tile(sizes, (fm * fm, 1))], axis=1)   # (256, 4)
    D = dbox.shape[0]

    key = jax.random.PRNGKey(0)
    k1, k2, k3, k4, k5 = jax.random.split(key, 5)

    ctr = jax.random.uniform(k1, (B, n_obj, 2), minval=0.25, maxval=0.75)
    wh = jax.random.uniform(k2, (B, n_obj, 2), minval=0.10, maxval=0.40)
    labels = jax.random.randint(k3, (B, n_obj), 0, C - 1).astype(jnp.float32)
    targets = jnp.concatenate([ctr - wh / 2, ctr + wh / 2,
                               labels[..., None]], axis=-1)           # (B,3,5)

    loc_data = 0.1 * jax.random.normal(k4, (B, D, 4), jnp.float32)
    conf_data = jax.random.normal(k5, (B, D, C), jnp.float32)

    # matching (glue, plain JAX)
    loc_t, conf_t = match_targets(targets, dbox, thresh=0.5, variances=(0.1, 0.2))

    # Pallas kernel for the loss hot path
    loss_l, loss_c = multibox_loss_pallas(loc_data, conf_data, loc_t, conf_t,
                                          negpos_ratio=3)
    jax.block_until_ready((loss_l, loss_c))

    # sanity check against a pure-JAX reference
    ref_l, ref_c = _reference_loss(loc_data, conf_data, loc_t, conf_t, 3)
    assert jnp.allclose(loss_l, ref_l, rtol=1e-4, atol=1e-4), (loss_l, ref_l)
    assert jnp.allclose(loss_c, ref_c, rtol=1e-4, atol=1e-4), (loss_c, ref_c)

    print("KERNEL_OK")
</pallas_src>

<mosaic_0001>
module attributes {stable_mosaic.version = 11 : i64} {
  func.func @_multibox_loss_kernel(%arg0: i32, %arg1: memref<1x4x256xf32, #tpu.memory_space<vmem>>, %arg2: memref<1x8x256xf32, #tpu.memory_space<vmem>>, %arg3: memref<1x4x256xf32, #tpu.memory_space<vmem>>, %arg4: memref<1x1x256xi32, #tpu.memory_space<vmem>>, %arg5: memref<1x3x128xf32, #tpu.memory_space<vmem>>) attributes {dimension_semantics = [#tpu.dimension_semantics<parallel>], iteration_bounds = array<i64: 2>, scalar_prefetch = 0 : i64, scratch_operands = 0 : i64, tpu.core_type = #tpu.core_type<tc>, window_params = [{transform_indices = @transform_0, window_bounds = array<i64: 1, 4, 256>}, {transform_indices = @transform_1, window_bounds = array<i64: 1, 8, 256>}, {transform_indices = @transform_2, window_bounds = array<i64: 1, 4, 256>}, {transform_indices = @transform_3, window_bounds = array<i64: 1, 1, 256>}, {transform_indices = @transform_4, window_bounds = array<i64: 1, 3, 128>}]} {
    %c0 = arith.constant 0 : index
    %c0_0 = arith.constant 0 : index
    %c0_1 = arith.constant 0 : index
    %0 = vector.load %arg4[%c0, %c0_0, %c0_1] : memref<1x1x256xi32, #tpu.memory_space<vmem>>, vector<1x1x256xi32>
    %1 = vector.shape_cast %0 : vector<1x1x256xi32> to vector<1x256xi32>
    %c0_i32 = arith.constant 0 : i32
    %2 = vector.broadcast %c0_i32 : i32 to vector<1x256xi32>
    %3 = arith.cmpi sge, %1, %2 : vector<1x256xi32>
    %c0_i32_2 = arith.constant 0 : i32
    %4 = vector.broadcast %c0_i32_2 : i32 to vector<1x256xi32>
    %5 = arith.cmpi sgt, %1, %4 : vector<1x256xi32>
    %6 = arith.extui %5 : vector<1x256xi1> to vector<1x256xi32>
    %7 = arith.sitofp %6 : vector<1x256xi32> to vector<1x256xf32>
    %c0_3 = arith.constant 0 : index
    %c0_4 = arith.constant 0 : index
    %c0_5 = arith.constant 0 : index
    %8 = vector.load %arg2[%c0_3, %c0_4, %c0_5] : memref<1x8x256xf32, #tpu.memory_space<vmem>>, vector<1x1x256xf32>
    %9 = vector.shape_cast %8 : vector<1x1x256xf32> to vector<1x256xf32>
    %c0_6 = arith.constant 0 : index
    %c1 = arith.constant 1 : index
    %c0_7 = arith.constant 0 : index
    %10 = vector.load %arg2[%c0_6, %c1, %c0_7] : memref<1x8x256xf32, #tpu.memory_space<vmem>>, vector<1x1x256xf32>
    %11 = vector.shape_cast %10 : vector<1x1x256xf32> to vector<1x256xf32>
    %12 = arith.maximumf %9, %11 : vector<1x256xf32>
    %c0_8 = arith.constant 0 : index
    %c2 = arith.constant 2 : index
    %c0_9 = arith.constant 0 : index
    %13 = vector.load %arg2[%c0_8, %c2, %c0_9] : memref<1x8x256xf32, #tpu.memory_space<vmem>>, vector<1x1x256xf32>
    %14 = vector.shape_cast %13 : vector<1x1x256xf32> to vector<1x256xf32>
    %15 = arith.maximumf %12, %14 : vector<1x256xf32>
    %c0_10 = arith.constant 0 : index
    %c3 = arith.constant 3 : index
    %c0_11 = arith.constant 0 : index
    %16 = vector.load %arg2[%c0_10, %c3, %c0_11] : memref<1x8x256xf32, #tpu.memory_space<vmem>>, vector<1x1x256xf32>
    %17 = vector.shape_cast %16 : vector<1x1x256xf32> to vector<1x256xf32>
    %18 = arith.maximumf %15, %17 : vector<1x256xf32>
    %c0_12 = arith.constant 0 : index
    %c4 = arith.constant 4 : index
    %c0_13 = arith.constant 0 : index
    %19 = vector.load %arg2[%c0_12, %c4, %c0_13] : memref<1x8x256xf32, #tpu.memory_space<vmem>>, vector<1x1x256xf32>
    %20 = vector.shape_cast %19 : vector<1x1x256xf32> to vector<1x256xf32>
    %21 = arith.maximumf %18, %20 : vector<1x256xf32>
    %c0_14 = arith.constant 0 : index
    %c5 = arith.constant 5 : index
    %c0_15 = arith.constant 0 : index
    %22 = vector.load %arg2[%c0_14, %c5, %c0_15] : memref<1x8x256xf32, #tpu.memory_space<vmem>>, vector<1x1x256xf32>
    %23 = vector.shape_cast %22 : vector<1x1x256xf32> to vector<1x256xf32>
    %24 = arith.maximumf %21, %23 : vector<1x256xf32>
    %c0_16 = arith.constant 0 : index
    %c6 = arith.constant 6 : index
    %c0_17 = arith.constant 0 : index
    %25 = vector.load %arg2[%c0_16, %c6, %c0_17] : memref<1x8x256xf32, #tpu.memory_space<vmem>>, vector<1x1x256xf32>
    %26 = vector.shape_cast %25 : vector<1x1x256xf32> to vector<1x256xf32>
    %27 = arith.maximumf %24, %26 : vector<1x256xf32>
    %c0_18 = arith.constant 0 : index
    %c7 = arith.constant 7 : index
    %c0_19 = arith.constant 0 : index
    %28 = vector.load %arg2[%c0_18, %c7, %c0_19] : memref<1x8x256xf32, #tpu.memory_space<vmem>>, vector<1x1x256xf32>
    %29 = vector.shape_cast %28 : vector<1x1x256xf32> to vector<1x256xf32>
    %30 = arith.maximumf %27, %29 : vector<1x256xf32>
    %cst = arith.constant 0.000000e+00 : f32
    %31 = vector.broadcast %cst : f32 to vector<1x256xf32>
    %cst_20 = arith.constant 0.000000e+00 : f32
    %32 = vector.broadcast %cst_20 : f32 to vector<1x256xf32>
    %c0_21 = arith.constant 0 : index
    %c0_22 = arith.constant 0 : index
    %c0_23 = arith.constant 0 : index
    %33 = vector.load %arg2[%c0_21, %c0_22, %c0_23] : memref<1x8x256xf32, #tpu.memory_space<vmem>>, vector<1x1x256xf32>
    %34 = vector.shape_cast %33 : vector<1x1x256xf32> to vector<1x256xf32>
    %35 = arith.subf %34, %30 : vector<1x256xf32>
    %36 = math.exp %35 : vector<1x256xf32>
    %37 = arith.addf %31, %36 : vector<1x256xf32>
    %c0_i32_24 = arith.constant 0 : i32
    %38 = vector.broadcast %c0_i32_24 : i32 to vector<1x256xi32>
    %39 = arith.cmpi eq, %1, %38 : vector<1x256xi32>
    %cst_25 = arith.constant 0.000000e+00 : f32
    %40 = vector.broadcast %cst_25 : f32 to vector<1x256xf32>
    %41 = arith.select %39, %34, %40 : vector<1x256xi1>, vector<1x256xf32>
    %42 = arith.addf %32, %41 : vector<1x256xf32>
    %c0_26 = arith.constant 0 : index
    %c1_27 = arith.constant 1 : index
    %c0_28 = arith.constant 0 : index
    %43 = vector.load %arg2[%c0_26, %c1_27, %c0_28] : memref<1x8x256xf32, #tpu.memory_space<vmem>>, vector<1x1x256xf32>
    %44 = vector.shape_cast %43 : vector<1x1x256xf32> to vector<1x256xf32>
    %45 = arith.subf %44, %30 : vector<1x256xf32>
    %46 = math.exp %45 : vector<1x256xf32>
    %47 = arith.addf %37, %46 : vector<1x256xf32>
    %c1_i32 = arith.constant 1 : i32
    %48 = vector.broadcast %c1_i32 : i32 to vector<1x256xi32>
    %49 = arith.cmpi eq, %1, %48 : vector<1x256xi32>
    %cst_29 = arith.constant 0.000000e+00 : f32
    %50 = vector.broadcast %cst_29 : f32 to vector<1x256xf32>
    %51 = arith.select %49, %44, %50 : vector<1x256xi1>, vector<1x256xf32>
    %52 = arith.addf %42, %51 : vector<1x256xf32>
    %c0_30 = arith.constant 0 : index
    %c2_31 = arith.constant 2 : index
    %c0_32 = arith.constant 0 : index
    %53 = vector.load %arg2[%c0_30, %c2_31, %c0_32] : memref<1x8x256xf32, #tpu.memory_space<vmem>>, vector<1x1x256xf32>
    %54 = vector.shape_cast %53 : vector<1x1x256xf32> to vector<1x256xf32>
    %55 = arith.subf %54, %30 : vector<1x256xf32>
    %56 = math.exp %55 : vector<1x256xf32>
    %57 = arith.addf %47, %56 : vector<1x256xf32>
    %c2_i32 = arith.constant 2 : i32
    %58 = vector.broadcast %c2_i32 : i32 to vector<1x256xi32>
    %59 = arith.cmpi eq, %1, %58 : vector<1x256xi32>
    %cst_33 = arith.constant 0.000000e+00 : f32
    %60 = vector.broadcast %cst_33 : f32 to vector<1x256xf32>
    %61 = arith.select %59, %54, %60 : vector<1x256xi1>, vector<1x256xf32>
    %62 = arith.addf %52, %61 : vector<1x256xf32>
    %c0_34 = arith.constant 0 : index
    %c3_35 = arith.constant 3 : index
    %c0_36 = arith.constant 0 : index
    %63 = vector.load %arg2[%c0_34, %c3_35, %c0_36] : memref<1x8x256xf32, #tpu.memory_space<vmem>>, vector<1x1x256xf32>
    %64 = vector.shape_cast %63 : vector<1x1x256xf32> to vector<1x256xf32>
    %65 = arith.subf %64, %30 : vector<1x256xf32>
    %66 = math.exp %65 : vector<1x256xf32>
    %67 = arith.addf %57, %66 : vector<1x256xf32>
    %c3_i32 = arith.constant 3 : i32
    %68 = vector.broadcast %c3_i32 : i32 to vector<1x256xi32>
    %69 = arith.cmpi eq, %1, %68 : vector<1x256xi32>
    %cst_37 = arith.constant 0.000000e+00 : f32
    %70 = vector.broadcast %cst_37 : f32 to vector<1x256xf32>
    %71 = arith.select %69, %64, %70 : vector<1x256xi1>, vector<1x256xf32>
    %72 = arith.addf %62, %71 : vector<1x256xf32>
    %c0_38 = arith.constant 0 : index
    %c4_39 = arith.constant 4 : index
    %c0_40 = arith.constant 0 : index
    %73 = vector.load %arg2[%c0_38, %c4_39, %c0_40] : memref<1x8x256xf32, #tpu.memory_space<vmem>>, vector<1x1x256xf32>
    %74 = vector.shape_cast %73 : vector<1x1x256xf32> to vector<1x256xf32>
    %75 = arith.subf %74, %30 : vector<1x256xf32>
    %76 = math.exp %75 : vector<1x256xf32>
    %77 = arith.addf %67, %76 : vector<1x256xf32>
    %c4_i32 = arith.constant 4 : i32
    %78 = vector.broadcast %c4_i32 : i32 to vector<1x256xi32>
    %79 = arith.cmpi eq, %1, %78 : vector<1x256xi32>
    %cst_41 = arith.constant 0.000000e+00 : f32
    %80 = vector.broadcast %cst_41 : f32 to vector<1x256xf32>
    %81 = arith.select %79, %74, %80 : vector<1x256xi1>, vector<1x256xf32>
    %82 = arith.addf %72, %81 : vector<1x256xf32>
    %c0_42 = arith.constant 0 : index
    %c5_43 = arith.constant 5 : index
    %c0_44 = arith.constant 0 : index
    %83 = vector.load %arg2[%c0_42, %c5_43, %c0_44] : memref<1x8x256xf32, #tpu.memory_space<vmem>>, vector<1x1x256xf32>
    %84 = vector.shape_cast %83 : vector<1x1x256xf32> to vector<1x256xf32>
    %85 = arith.subf %84, %30 : vector<1x256xf32>
    %86 = math.exp %85 : vector<1x256xf32>
    %87 = arith.addf %77, %86 : vector<1x256xf32>
    %c5_i32 = arith.constant 5 : i32
    %88 = vector.broadcast %c5_i32 : i32 to vector<1x256xi32>
    %89 = arith.cmpi eq, %1, %88 : vector<1x256xi32>
    %cst_45 = arith.constant 0.000000e+00 : f32
    %90 = vector.broadcast %cst_45 : f32 to vector<1x256xf32>
    %91 = arith.select %89, %84, %90 : vector<1x256xi1>, vector<1x256xf32>
    %92 = arith.addf %82, %91 : vector<1x256xf32>
    %c0_46 = arith.constant 0 : index
    %c6_47 = arith.constant 6 : index
    %c0_48 = arith.constant 0 : index
    %93 = vector.load %arg2[%c0_46, %c6_47, %c0_48] : memref<1x8x256xf32, #tpu.memory_space<vmem>>, vector<1x1x256xf32>
    %94 = vector.shape_cast %93 : vector<1x1x256xf32> to vector<1x256xf32>
    %95 = arith.subf %94, %30 : vector<1x256xf32>
    %96 = math.exp %95 : vector<1x256xf32>
    %97 = arith.addf %87, %96 : vector<1x256xf32>
    %c6_i32 = arith.constant 6 : i32
    %98 = vector.broadcast %c6_i32 : i32 to vector<1x256xi32>
    %99 = arith.cmpi eq, %1, %98 : vector<1x256xi32>
    %cst_49 = arith.constant 0.000000e+00 : f32
    %100 = vector.broadcast %cst_49 : f32 to vector<1x256xf32>
    %101 = arith.select %99, %94, %100 : vector<1x256xi1>, vector<1x256xf32>
    %102 = arith.addf %92, %101 : vector<1x256xf32>
    %c0_50 = arith.constant 0 : index
    %c7_51 = arith.constant 7 : index
    %c0_52 = arith.constant 0 : index
    %103 = vector.load %arg2[%c0_50, %c7_51, %c0_52] : memref<1x8x256xf32, #tpu.memory_space<vmem>>, vector<1x1x256xf32>
    %104 = vector.shape_cast %103 : vector<1x1x256xf32> to vector<1x256xf32>
    %105 = arith.subf %104, %30 : vector<1x256xf32>
    %106 = math.exp %105 : vector<1x256xf32>
    %107 = arith.addf %97, %106 : vector<1x256xf32>
    %c7_i32 = arith.constant 7 : i32
    %108 = vector.broadcast %c7_i32 : i32 to vector<1x256xi32>
    %109 = arith.cmpi eq, %1, %108 : vector<1x256xi32>
    %cst_53 = arith.constant 0.000000e+00 : f32
    %110 = vector.broadcast %cst_53 : f32 to vector<1x256xf32>
    %111 = arith.select %109, %104, %110 : vector<1x256xi1>, vector<1x256xf32>
    %112 = arith.addf %102, %111 : vector<1x256xf32>
    %113 = math.log %107 : vector<1x256xf32>
    %114 = arith.addf %113, %30 : vector<1x256xf32>
    %115 = arith.subf %114, %112 : vector<1x256xf32>
    %cst_54 = arith.constant 0.000000e+00 : f32
    %116 = vector.broadcast %cst_54 : f32 to vector<1x256xf32>
    %117 = arith.select %3, %115, %116 : vector<1x256xi1>, vector<1x256xf32>
    %c0_i32_55 = arith.constant 0 : i32
    %118 = vector.broadcast %c0_i32_55 : i32 to vector<1x256xi32>
    %119 = arith.cmpi sgt, %1, %118 : vector<1x256xi32>
    %cst_56 = arith.constant 0.000000e+00 : f32
    %120 = vector.broadcast %cst_56 : f32 to vector<1x256xf32>
    %121 = arith.select %119, %120, %117 : vector<1x256xi1>, vector<1x256xf32>
    %cst_57 = arith.constant dense<0.000000e+00> : vector<1xf32>
    %122 = vector.multi_reduction <add>, %7, %cst_57 [1] : vector<1x256xf32> to vector<1xf32>
    %123 = vector.shape_cast %122 : vector<1xf32> to vector<1x1xf32>
    %cst_58 = arith.constant 3.000000e+00 : f32
    %124 = vector.broadcast %cst_58 : f32 to vector<1x1xf32>
    %125 = arith.mulf %123, %124 : vector<1x1xf32>
    %cst_59 = arith.constant 2.560000e+02 : f32
    %126 = vector.broadcast %cst_59 : f32 to vector<1x1xf32>
    %127 = arith.minimumf %125, %126 : vector<1x1xf32>
    %128 = tpu.bitcast %121 : vector<1x256xf32> -> vector<1x256xi32>
    %c0_i32_60 = arith.constant 0 : i32
    %129 = vector.broadcast %c0_i32_60 : i32 to vector<1x1xi32>
    %c2139095040_i32 = arith.constant 2139095040 : i32
    %130 = vector.broadcast %c2139095040_i32 : i32 to vector<1x1xi32>
    %c0_i32_61 = arith.constant 0 : i32
    %c31_i32 = arith.constant 31 : i32
    %131 = arith.addi %c0_i32_61, %c31_i32 : i32
    %c1_i32_62 = arith.constant 1 : i32
    %132:2 = scf.for %arg6 = %c0_i32_61 to %131 step %c1_i32_62 iter_args(%arg7 = %129, %arg8 = %130) -> (vector<1x1xi32>, vector<1x1xi32>)  : i32 {
      %233 = arith.subi %arg8, %arg7 : vector<1x1xi32>
      %c1_i32_114 = arith.constant 1 : i32
      %234 = vector.broadcast %c1_i32_114 : i32 to vector<1x1xi32>
      %235 = arith.shrsi %233, %234 : vector<1x1xi32>
      %236 = arith.addi %arg7, %235 : vector<1x1xi32>
      %237 = vector.broadcast %236 : vector<1x1xi32> to vector<1x256xi32>
      %238 = arith.cmpi sgt, %128, %237 : vector<1x256xi32>
      %239 = arith.extui %238 : vector<1x256xi1> to vector<1x256xi32>
      %240 = arith.sitofp %239 : vector<1x256xi32> to vector<1x256xf32>
      %cst_115 = arith.constant dense<0.000000e+00> : vector<1xf32>
      %241 = vector.multi_reduction <add>, %240, %cst_115 [1] : vector<1x256xf32> to vector<1xf32>
      %242 = vector.shape_cast %241 : vector<1xf32> to vector<1x1xf32>
      %243 = arith.cmpf olt, %242, %127 : vector<1x1xf32>
      %c1_i32_116 = arith.constant 1 : i32
      %244 = vector.broadcast %c1_i32_116 : i32 to vector<1x1xi32>
      %245 = arith.addi %236, %244 : vector<1x1xi32>
      %246 = arith.select %243, %arg7, %245 : vector<1x1xi1>, vector<1x1xi32>
      %247 = arith.select %243, %236, %arg8 : vector<1x1xi1>, vector<1x1xi32>
      scf.yield %246, %247 : vector<1x1xi32>, vector<1x1xi32>
    }
    %133 = vector.broadcast %132#1 : vector<1x1xi32> to vector<1x256xi32>
    %134 = arith.cmpi sge, %128, %133 : vector<1x256xi32>
    %cst_63 = arith.constant 0.000000e+00 : f32
    %135 = vector.broadcast %cst_63 : f32 to vector<1x1xf32>
    %136 = arith.cmpf ogt, %127, %135 : vector<1x1xf32>
    %137 = vector.broadcast %136 : vector<1x1xi1> to vector<1x256xi1>
    %138 = arith.andi %134, %137 : vector<1x256xi1>
    %cst_64 = arith.constant 1.000000e+00 : f32
    %cst_65 = arith.constant 0.000000e+00 : f32
    %139 = vector.broadcast %cst_64 : f32 to vector<1x256xf32>
    %140 = vector.broadcast %cst_65 : f32 to vector<1x256xf32>
    %141 = arith.select %138, %139, %140 : vector<1x256xi1>, vector<1x256xf32>
    %142 = arith.maximumf %7, %141 : vector<1x256xf32>
    %143 = arith.mulf %117, %142 : vector<1x256xf32>
    %cst_66 = arith.constant dense<0.000000e+00> : vector<1xf32>
    %144 = vector.multi_reduction <add>, %143, %cst_66 [1] : vector<1x256xf32> to vector<1xf32>
    %145 = vector.shape_cast %144 : vector<1xf32> to vector<1x1xf32>
    %cst_67 = arith.constant 0.000000e+00 : f32
    %146 = vector.broadcast %cst_67 : f32 to vector<1x256xf32>
    %c0_68 = arith.constant 0 : index
    %c0_69 = arith.constant 0 : index
    %c0_70 = arith.constant 0 : index
    %147 = vector.load %arg1[%c0_68, %c0_69, %c0_70] : memref<1x4x256xf32, #tpu.memory_space<vmem>>, vector<1x1x256xf32>
    %148 = vector.shape_cast %147 : vector<1x1x256xf32> to vector<1x256xf32>
    %c0_71 = arith.constant 0 : index
    %c0_72 = arith.constant 0 : index
    %c0_73 = arith.constant 0 : index
    %149 = vector.load %arg3[%c0_71, %c0_72, %c0_73] : memref<1x4x256xf32, #tpu.memory_space<vmem>>, vector<1x1x256xf32>
    %150 = vector.shape_cast %149 : vector<1x1x256xf32> to vector<1x256xf32>
    %151 = arith.subf %148, %150 : vector<1x256xf32>
    %152 = math.absf %151 : vector<1x256xf32>
    %cst_74 = arith.constant 1.000000e+00 : f32
    %153 = vector.broadcast %cst_74 : f32 to vector<1x256xf32>
    %154 = arith.cmpf olt, %152, %153 : vector<1x256xf32>
    %cst_75 = arith.constant 5.000000e-01 : f32
    %155 = vector.broadcast %cst_75 : f32 to vector<1x256xf32>
    %156 = arith.mulf %155, %151 : vector<1x256xf32>
    %157 = arith.mulf %156, %151 : vector<1x256xf32>
    %cst_76 = arith.constant 5.000000e-01 : f32
    %158 = vector.broadcast %cst_76 : f32 to vector<1x256xf32>
    %159 = arith.subf %152, %158 : vector<1x256xf32>
    %160 = arith.select %154, %157, %159 : vector<1x256xi1>, vector<1x256xf32>
    %161 = arith.addf %146, %160 : vector<1x256xf32>
    %c0_77 = arith.constant 0 : index
    %c1_78 = arith.constant 1 : index
    %c0_79 = arith.constant 0 : index
    %162 = vector.load %arg1[%c0_77, %c1_78, %c0_79] : memref<1x4x256xf32, #tpu.memory_space<vmem>>, vector<1x1x256xf32>
    %163 = vector.shape_cast %162 : vector<1x1x256xf32> to vector<1x256xf32>
    %c0_80 = arith.constant 0 : index
    %c1_81 = arith.constant 1 : index
    %c0_82 = arith.constant 0 : index
    %164 = vector.load %arg3[%c0_80, %c1_81, %c0_82] : memref<1x4x256xf32, #tpu.memory_space<vmem>>, vector<1x1x256xf32>
    %165 = vector.shape_cast %164 : vector<1x1x256xf32> to vector<1x256xf32>
    %166 = arith.subf %163, %165 : vector<1x256xf32>
    %167 = math.absf %166 : vector<1x256xf32>
    %cst_83 = arith.constant 1.000000e+00 : f32
    %168 = vector.broadcast %cst_83 : f32 to vector<1x256xf32>
    %169 = arith.cmpf olt, %167, %168 : vector<1x256xf32>
    %cst_84 = arith.constant 5.000000e-01 : f32
    %170 = vector.broadcast %cst_84 : f32 to vector<1x256xf32>
    %171 = arith.mulf %170, %166 : vector<1x256xf32>
    %172 = arith.mulf %171, %166 : vector<1x256xf32>
    %cst_85 = arith.constant 5.000000e-01 : f32
    %173 = vector.broadcast %cst_85 : f32 to vector<1x256xf32>
    %174 = arith.subf %167, %173 : vector<1x256xf32>
    %175 = arith.select %169, %172, %174 : vector<1x256xi1>, vector<1x256xf32>
    %176 = arith.addf %161, %175 : vector<1x256xf32>
    %c0_86 = arith.constant 0 : index
    %c2_87 = arith.constant 2 : index
    %c0_88 = arith.constant 0 : index
    %177 = vector.load %arg1[%c0_86, %c2_87, %c0_88] : memref<1x4x256xf32, #tpu.memory_space<vmem>>, vector<1x1x256xf32>
    %178 = vector.shape_cast %177 : vector<1x1x256xf32> to vector<1x256xf32>
    %c0_89 = arith.constant 0 : index
    %c2_90 = arith.constant 2 : index
    %c0_91 = arith.constant 0 : index
    %179 = vector.load %arg3[%c0_89, %c2_90, %c0_91] : memref<1x4x256xf32, #tpu.memory_space<vmem>>, vector<1x1x256xf32>
    %180 = vector.shape_cast %179 : vector<1x1x256xf32> to vector<1x256xf32>
    %181 = arith.subf %178, %180 : vector<1x256xf32>
    %182 = math.absf %181 : vector<1x256xf32>
    %cst_92 = arith.constant 1.000000e+00 : f32
    %183 = vector.broadcast %cst_92 : f32 to vector<1x256xf32>
    %184 = arith.cmpf olt, %182, %183 : vector<1x256xf32>
    %cst_93 = arith.constant 5.000000e-01 : f32
    %185 = vector.broadcast %cst_93 : f32 to vector<1x256xf32>
    %186 = arith.mulf %185, %181 : vector<1x256xf32>
    %187 = arith.mulf %186, %181 : vector<1x256xf32>
    %cst_94 = arith.constant 5.000000e-01 : f32
    %188 = vector.broadcast %cst_94 : f32 to vector<1x256xf32>
    %189 = arith.subf %182, %188 : vector<1x256xf32>
    %190 = arith.select %184, %187, %189 : vector<1x256xi1>, vector<1x256xf32>
    %191 = arith.addf %176, %190 : vector<1x256xf32>
    %c0_95 = arith.constant 0 : index
    %c3_96 = arith.constant 3 : index
    %c0_97 = arith.constant 0 : index
    %192 = vector.load %arg1[%c0_95, %c3_96, %c0_97] : memref<1x4x256xf32, #tpu.memory_space<vmem>>, vector<1x1x256xf32>
    %193 = vector.shape_cast %192 : vector<1x1x256xf32> to vector<1x256xf32>
    %c0_98 = arith.constant 0 : index
    %c3_99 = arith.constant 3 : index
    %c0_100 = arith.constant 0 : index
    %194 = vector.load %arg3[%c0_98, %c3_99, %c0_100] : memref<1x4x256xf32, #tpu.memory_space<vmem>>, vector<1x1x256xf32>
    %195 = vector.shape_cast %194 : vector<1x1x256xf32> to vector<1x256xf32>
    %196 = arith.subf %193, %195 : vector<1x256xf32>
    %197 = math.absf %196 : vector<1x256xf32>
    %cst_101 = arith.constant 1.000000e+00 : f32
    %198 = vector.broadcast %cst_101 : f32 to vector<1x256xf32>
    %199 = arith.cmpf olt, %197, %198 : vector<1x256xf32>
    %cst_102 = arith.constant 5.000000e-01 : f32
    %200 = vector.broadcast %cst_102 : f32 to vector<1x256xf32>
    %201 = arith.mulf %200, %196 : vector<1x256xf32>
    %202 = arith.mulf %201, %196 : vector<1x256xf32>
    %cst_103 = arith.constant 5.000000e-01 : f32
    %203 = vector.broadcast %cst_103 : f32 to vector<1x256xf32>
    %204 = arith.subf %197, %203 : vector<1x256xf32>
    %205 = arith.select %199, %202, %204 : vector<1x256xi1>, vector<1x256xf32>
    %206 = arith.addf %191, %205 : vector<1x256xf32>
    %207 = arith.mulf %206, %7 : vector<1x256xf32>
    %cst_104 = arith.constant dense<0.000000e+00> : vector<1xf32>
    %208 = vector.multi_reduction <add>, %207, %cst_104 [1] : vector<1x256xf32> to vector<1xf32>
    %209 = vector.shape_cast %208 : vector<1xf32> to vector<1x1xf32>
    %210 = tpu.iota {dimensions = array<i32: 0>} : vector<3x128xi32>
    %c0_i32_105 = arith.constant 0 : i32
    %211 = vector.broadcast %c0_i32_105 : i32 to vector<3x128xi32>
    %212 = arith.cmpi eq, %210, %211 : vector<3x128xi32>
    %cst_106 = arith.constant 0.000000e+00 : f32
    %213 = vector.shape_cast %209 : vector<1x1xf32> to vector<1x1xf32>
    %214 = vector.broadcast %213 : vector<1x1xf32> to vector<3x128xf32>
    %215 = vector.broadcast %cst_106 : f32 to vector<3x128xf32>
    %216 = arith.select %212, %214, %215 : vector<3x128xi1>, vector<3x128xf32>
    %c1_i32_107 = arith.constant 1 : i32
    %217 = vector.broadcast %c1_i32_107 : i32 to vector<3x128xi32>
    %218 = arith.cmpi eq, %210, %217 : vector<3x128xi32>
    %cst_108 = arith.constant 0.000000e+00 : f32
    %219 = vector.shape_cast %145 : vector<1x1xf32> to vector<1x1xf32>
    %220 = vector.broadcast %219 : vector<1x1xf32> to vector<3x128xf32>
    %221 = vector.broadcast %cst_108 : f32 to vector<3x128xf32>
    %222 = arith.select %218, %220, %221 : vector<3x128xi1>, vector<3x128xf32>
    %223 = arith.addf %216, %222 : vector<3x128xf32>
    %c2_i32_109 = arith.constant 2 : i32
    %224 = vector.broadcast %c2_i32_109 : i32 to vector<3x128xi32>
    %225 = arith.cmpi eq, %210, %224 : vector<3x128xi32>
    %cst_110 = arith.constant 0.000000e+00 : f32
    %226 = vector.shape_cast %123 : vector<1x1xf32> to vector<1x1xf32>
    %227 = vector.broadcast %226 : vector<1x1xf32> to vector<3x128xf32>
    %228 = vector.broadcast %cst_110 : f32 to vector<3x128xf32>
    %229 = arith.select %225, %227, %228 : vector<3x128xi1>, vector<3x128xf32>
    %230 = arith.addf %223, %229 : vector<3x128xf32>
    %231 = vector.shape_cast %230 : vector<3x128xf32> to vector<1x3x128xf32>
    %c0_111 = arith.constant 0 : index
    %c0_112 = arith.constant 0 : index
    %c0_113 = arith.constant 0 : index
    %232 = vector.load %arg5[%c0_111, %c0_112, %c0_113] : memref<1x3x128xf32, #tpu.memory_space<vmem>>, vector<1x3x128xf32>
    tpu.vector_store %arg5[%c0_111, %c0_112, %c0_113], %231 {strides = array<i32>} : memref<1x3x128xf32, #tpu.memory_space<vmem>>, vector<1x3x128xf32>,
    return
  }
  func.func @transform_0(%arg0: i32) -> (i32, i32, i32) {
    %c0_i32 = arith.constant 0 : i32
    %c0_i32_0 = arith.constant 0 : i32
    %c0_i32_1 = arith.constant 0 : i32
    return %arg0, %c0_i32, %c0_i32_0 : i32, i32, i32
  }
  func.func @transform_1(%arg0: i32) -> (i32, i32, i32) {
    %c0_i32 = arith.constant 0 : i32
    %c0_i32_0 = arith.constant 0 : i32
    %c0_i32_1 = arith.constant 0 : i32
    return %arg0, %c0_i32, %c0_i32_0 : i32, i32, i32
  }
  func.func @transform_2(%arg0: i32) -> (i32, i32, i32) {
    %c0_i32 = arith.constant 0 : i32
    %c0_i32_0 = arith.constant 0 : i32
    %c0_i32_1 = arith.constant 0 : i32
    return %arg0, %c0_i32, %c0_i32_0 : i32, i32, i32
  }
  func.func @transform_3(%arg0: i32) -> (i32, i32, i32) {
    %c0_i32 = arith.constant 0 : i32
    %c0_i32_0 = arith.constant 0 : i32
    %c0_i32_1 = arith.constant 0 : i32
    return %arg0, %c0_i32, %c0_i32_0 : i32, i32, i32
  }
  func.func @transform_4(%arg0: i32) -> (i32, i32, i32) {
    %c0_i32 = arith.constant 0 : i32
    %c0_i32_0 = arith.constant 0 : i32
    %c0_i32_1 = arith.constant 0 : i32
    return %arg0, %c0_i32, %c0_i32_0 : i32, i32, i32
  }
}

</mosaic_0001>

<bundles_post_ra>
// kernel: tpu_custom_call.1
= control target key start
LH: loop header
LB: loop body
LE: loop exit
PB: predicated region body
PF: predicated region fallthrough
CT: control target
= control target key end

     0   :  { %s1314_s0 = inlined_call_operand.hbm [shape: f32[2,4,256], index: 0, kind: input, shape index: {}]   ;;  %s1315_s1 = inlined_call_operand.hbm [shape: f32[2,8,256], index: 1, kind: input, shape index: {}]   ;;  %s1316_s2 = inlined_call_operand.hbm [shape: f32[2,4,256], index: 2, kind: input, shape index: {}]   ;;  %s1317_s3 = inlined_call_operand.vmem [shape: s32[2,1,256], index: 3, kind: input, shape index: {}]   ;;  %s1318_s4 = inlined_call_operand.vmem [shape: f32[2,3,128], index: 4, kind: output, shape index: {}]  }
   0x1   :  { %1321 = sst [smem:[#allocation9_spill]] %s1314_s0 }
   0x2   :  { %9 = vsyncpa [#allocation3], 0 }
   0x3   :  { %11 = vsyncpa [#allocation3 + $0x1], 0 }
   0x4   :  { %12 = vsyncpa [#allocation5], 0 }
   0x5   :  { %14 = vsyncpa [#allocation5 + $0x1], 0  ;;  %s1025_s15 = smov 0   ;;  %s1027_s16 = smov 0  }
   0x6   :  { %s1029_s17 = smov 0   ;;  %s1031_s18 = smov 0  }
   0x7 LB: > { %s1044_s19 = sadd.s32 4294967295, %s980_s18   ;;  %s1047_s20 = sadd.s32 1, %s980_s18   ;;  %s980_s18 = sphi %s1031_s18, %s1333_s18   ;;  %s976_s17 = sphi %s1029_s17, %s1332_s17   ;;  %s972_s16 = sphi %s1027_s16, %s1331_s16   ;;  %s968_s15 = sphi %s1025_s15, %s1330_s15  }
   0x8   : > { %s24_s21 = ssub.s32 %s980_s18, %s1047_s20  ;;  %s27_s22 = sadd.s32 1, %s976_s17 }
   0x9   : > { %p25_p0 = scmp.eq.s32.totalorder %s24_s21, 0  ;;  %p34_p1 = scmp.ne.s32.totalorder %s976_s17, %s972_s16 }
   0xa   : > { %p35_p2 = scmp.eq.s32.totalorder %s980_s18, 0  ;;  %p40_p3 = scmp.ne.s32.totalorder %s972_s16, %s968_s15 }
   0xb   : > { %s1057_s23 = scalar_select %p25_p0, %s976_s17, %s27_s22  }
   0xc   : > { %p36_p4 = por %p35_p2, %p34_p1  ;;  %p41_p5 = scmp.eq.s32.totalorder %s1044_s19, 0 }
   0xd   : > { %p768_p6 = scmp.lt.s32.totalorder %s980_s18, 2  ;;  %s1066_s25 = sand.u32 1, %s976_s17  }
   0xe   : > { %p1061_p7 = por %p41_p5, %p40_p3  ;;  %s187_s27 = sand.u32 1, %s980_s18  }
   0xf   : > { %p1068_p8 = pnand %p768_p6, %p36_p4  ;;  %s715_s28 = sshll.u32 %s1066_s25, 4 }
  0x10   : > { %s1322_s24 = scalar_select %p1061_p7, 1, 0 }
  0x11   : > { %s750_s29 = sshll.u32 %s980_s18, 8  ;;  %s191_s30 = scalar_lea.vmem [#allocation4], %s715_s28 }
  0x12   : > { %s199_s5 = sshll.u32 %s191_s30, 4  ;;  %s197_s8 = scalar_lea.hbm %s1315_s1, %s750_s29  ;;  %s200_s5 = int_to_ptr.vmem [resolvable:$true] %s199_s5 }
  0x13   : > { %s1078_s9 = scalar_lea.sflag [#allocation5], %s187_s27  ;;  %s846_s10 = scalar_lea.hbm %s197_s8, 256 }
  0x14   : > { %p847_p9 = scmp.ne.s32.totalorder %s197_s8, %s846_s10  ;;  %p1082_p10 = pneg %p1068_p8 }
  0x15   : > { %s851_s14 = scalar_lea.hbm %s1315_s1, 512  ;;  %p852_p13 = scmp.lt.s32.totalorder %s197_s8, %s1315_s1 }
  0x16   : > { %p849_p11 = pnand %p1082_p10, %p847_p9  ;;  %p853_p0 = scmp.lt.s32.totalorder %s851_s14, %s846_s10 }
  0x18   : > { %p850_p12 = pneg %p849_p11  ;;  %p854_p1 = por %p853_p0, %p852_p13 }
  0x1a   : > { %p855_p2 = pnand %p854_p1, %p850_p12 }
  0x1c   : > { %858 = shalt.err (!%p855_p2)
}
  0x1d   : > { %s859_s22 = scalar_lea.vmem %s200_s5, 256  ;;  %s994_s27 = smov [#allocation4]  }
  0x1e   : > { %p860_p3 = scmp.ne.s32.totalorder %s200_s5, %s859_s22  ;;  %s864_s28 = sshll.u32 %s994_s27, 4  ;;  %s865_s28 = int_to_ptr.vmem [resolvable:$false] %s864_s28 }
  0x1f   : > { %s866_s29 = scalar_lea.vmem %s865_s28, 512  ;;  %p867_p6 = scmp.lt.s32.totalorder %s200_s5, %s865_s28 }
  0x20   : > { %p862_p4 = pnand %p860_p3, %p1082_p10  ;;  %p868_p9 = scmp.lt.s32.totalorder %s866_s29, %s859_s22 }
  0x22   : > { %p863_p5 = pneg %p862_p4  ;;  %p869_p11 = por %p868_p9, %p867_p6 }
  0x24   : > { %p870_p7 = pnand %p869_p11, %p863_p5 }
  0x26   : > { %873 = shalt.err (!%p870_p7)
}
  0x27   : > { %764 = dma.hbm_to_vmem [thread:$0]  (!%p1068_p8), %s197_s8, 256, %s200_s5, %s1078_s9  }
  0x28   : > { %p721_p12 = scmp.ge.s32.totalorder %s980_s18, 1  ;;  %p230_p13 = scmp.lt.s32.totalorder %s980_s18, 3 }
  0x29   : > { %s1320_s30 = sshll.u32 %s1066_s25, 3  ;;  %s749_s7 = sshll.u32 %s980_s18, 7 }
  0x2a   : > { %p1102_p0 = pnand %p721_p12, %p230_p13  ;;  %s172_s10 = scalar_lea.vmem [#allocation2], %s1320_s30 }
  0x2b   : > { %s180_s12 = sshll.u32 %s172_s10, 4  ;;  %s1326_s0 = sld [smem:[#allocation9_spill]]  ;;  %s181_s12 = int_to_ptr.vmem [resolvable:$true] %s180_s12 }
  0x2c   : > { %s1325_s6 = scalar_select %p1102_p0, 1, 0 }
  0x2d   : > { %s169_s21 = scalar_lea.sflag [#allocation3], %s1066_s25 }
  0x31   : > { %s178_s15 = scalar_lea.hbm %s1326_s0, %s749_s7  ;;  %s879_s27 = scalar_lea.hbm %s1326_s0, 256 }
  0x32   : > { %s874_s22 = scalar_lea.hbm %s178_s15, 128  ;;  %p880_p3 = scmp.lt.s32.totalorder %s178_s15, %s1326_s0 }
  0x33   : > { %p875_p7 = scmp.ne.s32.totalorder %s178_s15, %s874_s22  ;;  %p881_p4 = scmp.lt.s32.totalorder %s879_s27, %s874_s22 }
  0x35   : > { %p877_p1 = pnand %p875_p7, %p1082_p10  ;;  %p882_p5 = por %p881_p4, %p880_p3 }
  0x37   : > { %p878_p2 = pneg %p877_p1 }
  0x39   : > { %p883_p6 = pnand %p882_p5, %p878_p2 }
  0x3b   : > { %886 = shalt.err (!%p883_p6)
}
  0x3c   : > { %s887_s10 = scalar_lea.vmem %s181_s12, 128  ;;  %s995_s13 = smov [#allocation2]  }
  0x3d   : > { %p888_p9 = scmp.ne.s32.totalorder %s181_s12, %s887_s10  ;;  %s892_s14 = sshll.u32 %s995_s13, 4  ;;  %s893_s14 = int_to_ptr.vmem [resolvable:$false] %s892_s14 }
  0x3e   : > { %s894_s30 = scalar_lea.vmem %s893_s14, 256  ;;  %p895_p13 = scmp.lt.s32.totalorder %s181_s12, %s893_s14 }
  0x3f   : > { %p890_p11 = pnand %p888_p9, %p1082_p10  ;;  %p896_p7 = scmp.lt.s32.totalorder %s894_s30, %s887_s10 }
  0x41   : > { %p891_p12 = pneg %p890_p11  ;;  %p897_p1 = por %p896_p7, %p895_p13 }
  0x43   : > { %p898_p0 = pnand %p897_p1, %p891_p12 }
  0x45   : > { %901 = shalt.err (!%p898_p0)
}
  0x46   : > { %761 = dma.hbm_to_vmem [thread:$0]  (!%p1068_p8), %s178_s15, 128, %s181_s12, %s169_s21  }
  0x47   : > { %s216_s8 = scalar_lea.hbm %s1316_s2, %s749_s7  ;;  %s1327_s27 = sshll.u32 %s1066_s25, 3 }
  0x48   : > { %s210_s28 = scalar_lea.vmem [#allocation6], %s1327_s27  ;;  %s902_s13 = scalar_lea.hbm %s216_s8, 128 }
  0x49   : > { %s218_s29 = sshll.u32 %s210_s28, 4  ;;  %p903_p2 = scmp.ne.s32.totalorder %s216_s8, %s902_s13  ;;  %s219_s29 = int_to_ptr.vmem [resolvable:$true] %s218_s29 }
  0x4a   : > { %s907_s14 = scalar_lea.hbm %s1316_s2, 256  ;;  %p908_p4 = scmp.lt.s32.totalorder %s216_s8, %s1316_s2 }
  0x4b   : > { %p905_p3 = pnand %p903_p2, %p1082_p10  ;;  %p909_p5 = scmp.lt.s32.totalorder %s907_s14, %s902_s13 }
  0x4d   : > { %p906_p0 = pneg %p905_p3  ;;  %p910_p6 = por %p909_p5, %p908_p4 }
  0x4f   : > { %p911_p9 = pnand %p910_p6, %p906_p0 }
  0x51   : > { %914 = shalt.err (!%p911_p9)
}
  0x52   : > { %s915_s18 = scalar_lea.vmem %s219_s29, 128  ;;  %s996_s25 = smov [#allocation6]  }
  0x53   : > { %p916_p11 = scmp.ne.s32.totalorder %s219_s29, %s915_s18  ;;  %s920_s7 = sshll.u32 %s996_s25, 4  ;;  %s921_s7 = int_to_ptr.vmem [resolvable:$false] %s920_s7 }
  0x54   : > { %s922_s15 = scalar_lea.vmem %s921_s7, 256  ;;  %p923_p7 = scmp.lt.s32.totalorder %s219_s29, %s921_s7 }
  0x55   : > { %p918_p12 = pnand %p916_p11, %p1082_p10  ;;  %p924_p1 = scmp.lt.s32.totalorder %s922_s15, %s915_s18 }
  0x57   : > { %p919_p13 = pneg %p918_p12  ;;  %p925_p2 = por %p924_p1, %p923_p7 }
  0x59   : > { %p926_p3 = pnand %p925_p2, %p919_p13 }
  0x5b   : > { %929 = shalt.err (!%p926_p3)
}
  0x5c   : > { %767 = dma.hbm_to_vmem [thread:$0]  (!%p1068_p8), %s216_s8, 128, %s219_s29, %s1078_s9  }
  0x5d   : > { %p1328_p0 = scmp.ne.s32.totalorder %s1325_s6, 0 }
  0x5e   : > { %s1150_s0 = sand.u32 (!%p1328_p0), 1, %s972_s16   ;;  %p1329_p10 = scmp.ne.s32.totalorder (!%p1328_p0), %s1322_s24, 0 }
  0x5f   : > { %234 = sbr.rel (%p1328_p0) target bundleno = 578 (0x242), region = 36  ;;  %s722_s11 = sshll.u32 (!%p1328_p0), %s1150_s0, 3 }
  0x60   : > { %s237_s21 = scalar_lea.sflag (!%p1328_p0), [#allocation3], %s1150_s0  ;;  %s1156_s22 = scalar_lea.vmem (!%p1328_p0), [#allocation2], %s722_s11 }
  0x64   : > { %959 = dma.done.wait (%p1329_p10), %s237_s21, 128  }
  0x65   : > { %961 = vsyncadd (%p1329_p10), %s237_s21, 4294967168  ;;  %s245_s26 = sand.u32 1, %s1044_s19   ;;  %s723_s9 = sshll.u32 %s1150_s0, 4 }
  0x66   : > { %s246_s6 = scalar_lea.sflag [#allocation5], %s245_s26  ;;  %s1164_s5 = scalar_lea.vmem [#allocation4], %s723_s9 }
  0x67   : > { %963 = dma.done.wait (%p1329_p10), %s246_s6, 384  }
  0x68   : > { %965 = vsyncadd (%p1329_p10), %s246_s6, 4294966912  ;;  %p296_p8 = scmp.lt.s32.totalorder %s1044_s19, 1  ;;  %v394_v0 = vlaneseq  ;;  %v309_v3 = vld [vmem:[%s1164_s5] ss:$8 sm:$0x3]  ;;  %v997_v7 = vmov 0.0  }
  0x69   : > { %v728_v4 = vld [vmem:[%s1164_s5 + $0x1] ss:$8 sm:$0x3]  ;;  %v729_v10 = vld [vmem:[%s1164_s5 + $0x2] ss:$8 sm:$0x3] }
  0x6a   : > { %s1335_s19 = smov (!%p296_p8, %s1044_s19), 1  ;;  %v1172_v1 = vshrl.u32 %v394_v0, 7  ;;  %v312_v9 = vmax.f32 %v309_v3, %v728_v4  ;;  %v1200_v11 = vld [vmem:[%s1164_s5 + $0x3] ss:$8 sm:$0x3]  ;;  %vm404_vm1 = vcmask 1040384  }
  0x6b   : > { %s725_s8 = sshll.u32 %s1335_s19, 1  ;;  %s726_s27 = sshll.u32 %s1335_s19, 2  ;;  %v1203_v13 = vld [vmem:[%s1164_s5 + $0x4] ss:$8 sm:$0x3] }
  0x6c   : > { %s299_s13 = scalar_lea.vmem %s1317_s3, %s725_s8  ;;  %s1180_s10 = scalar_lea.vmem %s1318_s4, %s726_s27  ;;  %v1188_v5 = vsub.s32 0, %v1172_v1  ;;  %v1191_v6 = vsub.s32 1, %v1172_v1  ;;  %v315_v12 = vmax.f32 %v312_v9, %v729_v10  ;;  %v1211_v17 = vld [vmem:[%s1164_s5 + $0x5] ss:$8 sm:$0x3] }
  0x6d   : > { %v1182_v2 = vld [vmem:[%s299_s13] sm:$0x3]  ;;  %v1215_v19 = vld [vmem:[%s1164_s5 + $0x6] ss:$8 sm:$0x3]  ;;  %s1267_s19 = scalar_lea.vmem [#allocation6], %s722_s11 }
  0x6e   : > { %vm306_vm0 = vcmp.gt.s32.totalorder %v1182_v2, 0  ;;  %v318_v16 = vmax.f32 %v315_v12, %v1200_v11  ;;  %v1221_v24 = vld [vmem:[%s1164_s5 + $0x7] ss:$8 sm:$0x3]  ;;  %vm335_vm2 = vcmp.eq.s32.totalorder %v1182_v2, 0  ;;  %vm342_vm3 = vcmp.eq.s32.totalorder %v1182_v2, 1 }
  0x6f   : > { %v1196_v8 = vsel %vm306_vm0, 1.0, %v997_v7  ;;  %v336_v48 = vsel %vm335_vm2, %v309_v3, 0.0  ;;  %v343_v49 = vsel %vm342_vm3, %v728_v4, 0.0  ;;  %vm349_vm4 = vcmp.eq.s32.totalorder %v1182_v2, 2  ;;  %s990_s14 = smov 0  }
  0x70   : > { %v397_v14 = vrot.slane %v1196_v8, %v1188_v5  ;;  %v401_v15 = vrot.slane %v1196_v8, %v1191_v6  ;;  %v321_v18 = vmax.f32 %v318_v16, %v1203_v13  ;;  %v344_v52 = vadd.f32 %v343_v49, %v336_v48 }
  0x71   : > { %v350_v55 = vsel %vm349_vm4, %v729_v10, 0.0  ;;  %vm356_vm5 = vcmp.eq.s32.totalorder %v1182_v2, 3  ;;  %vm363_vm6 = vcmp.eq.s32.totalorder %v1182_v2, 4  ;;  %vm370_vm7 = vcmp.eq.s32.totalorder %v1182_v2, 5 }
  0x72   : > { %v405_v20 = vsel %vm404_vm1, %v397_v14, 0.0  ;;  %v406_v21 = vsel %vm404_vm1, %v401_v15, 0.0  ;;  %v324_v22 = vmax.f32 %v321_v18, %v1211_v17  ;;  %v351_v58 = vadd.f32 %v350_v55, %v344_v52 }
  0x73   : > { %v407_v23 = vadd.f32 %v406_v21, %v405_v20  ;;  %v357_v61 = vsel %vm356_vm5, %v1200_v11, 0.0  ;;  %v371_v9 = vsel %vm370_vm7, %v1211_v17, 0.0  ;;  %vm377_vm8 = vcmp.eq.s32.totalorder %v1182_v2, 6 }
  0x74   : > { %v327_v25 = vmax.f32 %v324_v22, %v1215_v19  ;;  %v358_v63 = vadd.f32 %v357_v61, %v351_v58  ;;  %v378_v12 = vsel %vm377_vm8, %v1215_v19, 0.0  ;;  %vm384_vm9 = vcmp.eq.s32.totalorder %v1182_v2, 7 }
  0x75   : > { %408 = vadd.xlane.f32.xlu0 %v407_v23  ;;  %v385_v14 = vsel %vm384_vm9, %v1221_v24, 0.0  ;;  %vm305_vm10 = vcmp.ge.s32.totalorder %v1182_v2, 0 }
  0x76   : > { %v1225_v26 = vmax.f32 %v327_v25, %v1221_v24 }
  0x78   : > { %v331_v27 = vsub.f32 %v309_v3, %v1225_v26  ;;  %v338_v28 = vsub.f32 %v728_v4, %v1225_v26  ;;  %v345_v29 = vsub.f32 %v729_v10, %v1225_v26  ;;  %v352_v30 = vsub.f32 %v1200_v11, %v1225_v26 }
  0x79   : > { %v359_v31 = vsub.f32 %v1203_v13, %v1225_v26  ;;  %v366_v36 = vsub.f32 %v1211_v17, %v1225_v26  ;;  %v373_v38 = vsub.f32 %v1215_v19, %v1225_v26  ;;  %v380_v40 = vsub.f32 %v1221_v24, %v1225_v26 }
  0x7a   : > { %v332_v32 = vmul.f32 1.442695, %v331_v27  ;;  %v339_v33 = vmul.f32 1.442695, %v338_v28  ;;  %v346_v34 = vmul.f32 1.442695, %v345_v29 }
  0x7b   : > { %v353_v35 = vmul.f32 1.442695, %v352_v30  ;;  %v360_v37 = vmul.f32 1.442695, %v359_v31  ;;  %v367_v39 = vmul.f32 1.442695, %v366_v36 }
  0x7c   : > { %828 = vpow2.f32 %v332_v32  ;;  %v374_v41 = vmul.f32 1.442695, %v373_v38  ;;  %v381_v42 = vmul.f32 1.442695, %v380_v40  ;;  %v364_v3 = vsel %vm363_vm6, %v1203_v13, 0.0 }
  0x7d   : > { %830 = vpow2.f32 %v339_v33  ;;  %v365_v4 = vadd.f32 %v364_v3, %v358_v63  ;;  %v986_v27 = vmov 0  }
  0x7e   : > { %832 = vpow2.f32 %v346_v34 }
  0x7f   : > { %834 = vpow2.f32 %v353_v35  ;;  %v372_v10 = vadd.f32 %v371_v9, %v365_v4 }
  0x80   : > { %836 = vpow2.f32 %v360_v37 }
  0x81   : > { %838 = vpow2.f32 %v367_v39  ;;  %v379_v11 = vadd.f32 %v378_v12, %v372_v10 }
  0x82   : > { %840 = vpow2.f32 %v374_v41 }
  0x83   : > { %842 = vpow2.f32 %v381_v42  ;;  %v386_v16 = vadd.f32 %v385_v14, %v379_v11 }
  0x89   : > { %v829_v43 = vpop.eup %828 }
  0x8a   : > { %v831_v44 = vpop.eup %830 }
  0x8b   : > { %v833_v45 = vpop.eup %832  ;;  %v341_v46 = vadd.f32 %v831_v44, %v829_v43 }
  0x8c   : > { %v835_v47 = vpop.eup %834 }
  0x8d   : > { %v348_v50 = vadd.f32 %v833_v45, %v341_v46  ;;  %v837_v51 = vpop.eup %836 }
  0x8e   : > { %v839_v54 = vpop.eup %838 }
  0x8f   : > { %v355_v53 = vadd.f32 %v835_v47, %v348_v50  ;;  %v841_v57 = vpop.eup %840 }
  0x90   : > { %v843_v60 = vpop.eup %842 }
  0x91   : > { %v362_v56 = vadd.f32 %v837_v51, %v355_v53 }
  0x93   : > { %v369_v59 = vadd.f32 %v839_v54, %v362_v56 }
  0x95   : > { %v376_v62 = vadd.f32 %v841_v57, %v369_v59 }
  0x97   : > { %v383_v0 = vadd.f32 %v843_v60, %v376_v62 }
  0x99   : > { %844 = vlog2.f32 %v383_v0 }
  0xa6   : > { %v845_v15 = vpop.eup %844 }
  0xa7   : > { %v388_v13 = vmul.f32 0.6931472, %v845_v15 }
  0xa9   : > { %v389_v18 = vadd.f32 %v388_v13, %v1225_v26  ;;  %v982_v26 = vmov 2139095040  }
  0xab   : > { %v390_v20 = vsub.f32 %v389_v18, %v386_v16 }
  0xad   : > { %v1255_v17 = vsel %vm305_vm10, %v390_v20, 0.0 }
  0xae   : > { %v392_v19 = vsel %vm306_vm0, 0.0, %v1255_v17 }
  0xaf   : > { %v416_v21 = vrot.slane %v392_v19, %v1188_v5  ;;  %v420_v22 = vrot.slane %v392_v19, %v1191_v6 }
  0xfe   : > { %v1262_v23 = vpop.xlane.xlu0 %408 }
  0xff   : > { %v410_v24 = vmul.f32 3.0, %v1262_v23 }
 0x101   : > { %v411_v25 = vmin.f32 %v410_v24, 256.0 }
 0x102 LB: >> { %v429_v2 = vsub.s32 %v984_v26, %v988_v27  ;;  %v998_v30 = vmov 0.0   ;;  %s426_s14 = sadd.s32 1, %s992_s14   ;;  %s992_s14 = sphi %s990_s14, %s426_s14   ;;  %v988_v27 = vphi %v986_v27, %v445_v27   ;;  %v984_v26 = vphi %v982_v26, %v983_v26  }
 0x103   : >> { %p423_p4 = scmp.ge.s32.totalorder %s426_s14, 31  }
 0x104   : >> { %v430_v28 = vshra.s32 %v429_v2, 1  ;;  %vm449_vm0 = vcmp.gt.f32.partialorder (%p423_p4), %v411_v25, 0.0  ;;  %v492_v39 = vld [vmem:[%s1156_s22] ss:$4 sm:$0x3] (%p423_p4)  ;;  %vm563_vm8 = vcmp.eq.s32.totalorder (%p423_p4), %v1172_v1, 1 }
 0x105   : > { %v999_v40 = vmov (%p423_p4), 1966171168   ;;  %v493_v42 = vld [vmem:[%s1267_s19] ss:$4 sm:$0x3] (%p423_p4)  ;;  %vm557_vm9 = vcmp.eq.s32.totalorder (%p423_p4), %v1172_v1, 0 }
 0x106   : >> { %v431_v29 = vadd.s32 %v988_v27, %v430_v28  ;;  %v460_v41 = vunpack.c.l.s4 (%p423_p4), %v999_v40  ;;  %v738_v43 = vld [vmem:[%s1156_s22 + $0x1] ss:$4 sm:$0x3] (%p423_p4)  ;;  %v494_v45 = vsub.f32 (%p423_p4), %v492_v39, %v493_v42  ;;  %v739_v46 = vld [vmem:[%s1267_s19 + $0x1] ss:$4 sm:$0x3] (%p423_p4)  ;;  %v574_v39 = vrot.slane (%p423_p4), %v1262_v23, %v1188_v5 }
 0x107   : > { %v506_v49 = vsub.f32 (%p423_p4), %v738_v43, %v739_v46  ;;  %v741_v50 = vld [vmem:[%s1156_s22 + $0x2] ss:$4 sm:$0x3] (%p423_p4)  ;;  %v742_v54 = vld [vmem:[%s1267_s19 + $0x2] ss:$4 sm:$0x3] (%p423_p4) }
 0x108   : >> { %vm432_vm11 = vcmp.gt.s32.totalorder %v416_v21, %v431_v29  ;;  %vm433_vm12 = vcmp.gt.s32.totalorder %v420_v22, %v431_v29  ;;  %v444_v36 = vadd.s32 1, %v431_v29  ;;  %v461_v48 = vunpack.c.0.s8 (%p423_p4), %v460_v41  ;;  %v744_v59 = vld [vmem:[%s1156_s22 + $0x3] ss:$4 sm:$0x3] (%p423_p4) }
 0x109   : >> { %v735_v31 = vsel %vm432_vm11, 1.0, %v998_v30  ;;  %v736_v32 = vsel %vm433_vm12, 1.0, %v998_v30  ;;  %v495_v52 = vand.u32 (%p423_p4), 2147483647, %v494_v45  ;;  %v497_v53 = vmul.f32 (%p423_p4), 0.5, %v494_v45 }
 0x10a   : >> { %v438_v33 = vsel %vm404_vm1, %v735_v31, 0.0  ;;  %v439_v34 = vsel %vm404_vm1, %v736_v32, 0.0  ;;  %v464_v55 = vsub.s32 (%p423_p4), %v461_v48, %v1172_v1  ;;  %v507_v56 = vand.u32 (%p423_p4), 2147483647, %v506_v49 }
 0x10b   : >> { %v440_v35 = vadd.f32 %v439_v34, %v438_v33  ;;  %v509_v57 = vmul.f32 (%p423_p4), 0.5, %v506_v49  ;;  %v518_v58 = vsub.f32 (%p423_p4), %v741_v50, %v742_v54  ;;  %vm496_vm4 = vcmp.lt.f32.partialorder (%p423_p4), %v495_v52, 1.0  ;;  %v745_v62 = vld [vmem:[%s1267_s19 + $0x3] ss:$4 sm:$0x3] (%p423_p4) }
 0x10c   : > { %v498_v60 = vmul.f32 (%p423_p4), %v497_v53, %v494_v45  ;;  %v737_v61 = vadd.f32 (%p423_p4), -0.5, %v495_v52  ;;  %vm508_vm5 = vcmp.lt.f32.partialorder (%p423_p4), %v507_v56, 1.0  ;;  %v740_v0 = vadd.f32 (%p423_p4), -0.5, %v507_v56 }
 0x10d   : >> { %441 = vadd.xlane.f32.xlu0 %v440_v35  ;;  %v519_v4 = vand.u32 (%p423_p4), 2147483647, %v518_v58  ;;  %v521_v9 = vmul.f32 (%p423_p4), 0.5, %v518_v58  ;;  %v530_v10 = vsub.f32 (%p423_p4), %v744_v59, %v745_v62  ;;  %vm570_vm10 = vcmp.eq.s32.totalorder (%p423_p4), %v1172_v1, 2 }
 0x10e   : > { %v500_v3 = vsel (%p423_p4), %vm496_vm4, %v498_v60, %v737_v61  ;;  %v575_v41 = vsel (%p423_p4), %vm570_vm10, %v574_v39, 0.0 }
 0x10f   : > { %vm520_vm6 = vcmp.lt.f32.partialorder (%p423_p4), %v519_v4, 1.0  ;;  %v522_v15 = vmul.f32 (%p423_p4), %v521_v9, %v518_v58  ;;  %v743_v16 = vadd.f32 (%p423_p4), -0.5, %v519_v4  ;;  %v531_v18 = vand.u32 (%p423_p4), 2147483647, %v530_v10 }
 0x110   : > { %v533_v20 = vmul.f32 (%p423_p4), 0.5, %v530_v10 }
 0x111   : > { %v524_v19 = vsel (%p423_p4), %vm520_vm6, %v522_v15, %v743_v16  ;;  %vm532_vm7 = vcmp.lt.f32.partialorder (%p423_p4), %v531_v18, 1.0 }
 0x112   : > { %v534_v24 = vmul.f32 (%p423_p4), %v533_v20, %v530_v10 }
 0x195   : > { %425 = sbr.rel (!%p423_p4) target bundleno = 258 (0x102), region = 123 }
 0x196   : >> { %v442_v37 = vpop.xlane.xlu0 %441 }
 0x197   : >> { %vm443_vm13 = vcmp.lt.f32.partialorder %v442_v37, %v411_v25  ;;  %v746_v25 = vadd.f32 (%p423_p4), -0.5, %v531_v18 }
 0x198   : >> { %v445_v27 = vsel %vm443_vm13, %v988_v27, %v444_v36   ;;  %v446_v38 = vsel %vm443_vm13, %v431_v29, %v984_v26  }
 0x199   : >> { %v983_v26 = vmov %v446_v38   ;;  %vm447_vm14 = vcmp.ge.s32.totalorder (%p423_p4), %v416_v21, %v446_v38  ;;  %vm448_vm15 = vcmp.ge.s32.totalorder (%p423_p4), %v420_v22, %v446_v38  ;;  %v536_v2 = vsel (%p423_p4), %vm532_vm7, %v534_v24, %v746_v25 }
 0x19a   : > { %vm452_vm2 = vmand %vm447_vm14, %vm449_vm0 }
 0x19b   : > { %vm453_vm3 = vmand %vm448_vm15, %vm449_vm0  ;;  %v454_v44 = vsel %vm452_vm2, 1.0, %v997_v7 }
 0x19c   : > { %v455_v47 = vsel %vm453_vm3, 1.0, %v997_v7  ;;  %v510_v7 = vmul.f32 %v509_v57, %v506_v49 }
 0x19d   : > { %v458_v51 = vcombine.low %v454_v44, %v455_v47 }
 0x19e   : > { %v512_v11 = vsel %vm508_vm5, %v510_v7, %v740_v0 }
 0x19f   : > { %v465_v63 = vrot.slane %v458_v51, %v464_v55  ;;  %v513_v14 = vadd.f32 %v512_v11, %v500_v3 }
 0x1a1   : > { %v472_v12 = vrot.slane %v465_v63, %v464_v55  ;;  %v525_v22 = vadd.f32 %v524_v19, %v513_v14 }
 0x1a3   : > { %v474_v13 = vmax.f32 %v1196_v8, %v472_v12  ;;  %v537_v30 = vadd.f32 %v536_v2, %v525_v22 }
 0x1a5   : > { %v475_v21 = vmul.f32 %v474_v13, %v1255_v17  ;;  %v538_v32 = vmul.f32 %v1196_v8, %v537_v30 }
 0x1a7   : > { %v480_v26 = vrot.slane %v475_v21, %v1188_v5  ;;  %v484_v27 = vrot.slane %v475_v21, %v1191_v6  ;;  %v543_v17 = vrot.slane %v538_v32, %v1188_v5  ;;  %v547_v33 = vrot.slane %v538_v32, %v1191_v6 }
 0x1a9   : > { %v487_v28 = vsel %vm404_vm1, %v480_v26, 0.0  ;;  %v488_v29 = vsel %vm404_vm1, %v484_v27, 0.0  ;;  %v550_v34 = vsel %vm404_vm1, %v543_v17, 0.0  ;;  %v551_v35 = vsel %vm404_vm1, %v547_v33, 0.0 }
 0x1aa   : > { %v489_v31 = vadd.f32 %v488_v29, %v487_v28  ;;  %v552_v36 = vadd.f32 %v551_v35, %v550_v34 }
 0x1ac   : > { %490 = vadd.xlane.f32.xlu0 %v489_v31 }
 0x1b0   : > { %553 = vadd.xlane.f32.xlu0 %v552_v36 }
 0x235   : > { %v491_v37 = vpop.xlane.xlu0 %490 }
 0x236   : > { %v567_v38 = vrot.slane %v491_v37, %v1188_v5 }
 0x238   : > { %v568_v40 = vsel %vm563_vm8, %v567_v38, 0.0 }
 0x239   : > { %v554_v6 = vpop.xlane.xlu0 %553 }
 0x23a   : > { %v561_v8 = vrot.slane %v554_v6, %v1188_v5 }
 0x23c   : > { %v562_v42 = vsel %vm557_vm9, %v561_v8, 0.0 }
 0x23d   : > { %v569_v43 = vadd.f32 %v568_v40, %v562_v42 }
 0x23f   : > { %v576_v44 = vadd.f32 %v575_v41, %v569_v43 }
 0x241   : > { %577 = vst [vmem:[%s1180_s10] sm:$0x7] %v576_v44 }
 0x242 PF: > { %p17_p5 = scmp.ge.s32.totalorder %s1047_s20, 4   ;;  %s1330_s15 = smov %s972_s16 }
 0x243   : > { %s1331_s16 = smov %s976_s17  ;;  %s1332_s17 = smov %s1057_s23 }
 0x244   : > { %s1333_s18 = smov %s1047_s20  ;;  %19 = sbr.rel (!%p17_p5) target bundleno = 7 (0x7), region = 134 }
 0x249   :  { %597 = vsyncpa [#allocation3], 1 }
 0x24a   :  { %599 = vsyncpa [#allocation3 + $0x1], 1 }
 0x24b   :  { %600 = vsyncpa [#allocation5], 1 }
 0x24c   :  { %602 = vsyncpa [#allocation5 + $0x1], 1 }

</bundles_post_ra>
